<compile_context>
chip_gen: v6e
topology: v6e:2x2x1
jax: 0.10.0
libtpu: 0.0.40
codegen_flags: <defaults>
</compile_context>

<pallas_src>
import jax
import jax.numpy as jnp
from jax import lax
from jax.experimental import pallas as pl
from jax.experimental.pallas import tpu as pltpu

LANE = 128
SUBLANE = 8
CHUNK_ROWS = 1024   # in-kernel accumulation strip; bounds intermediates to ~0.5 MiB


def _cdiv(a, b):
    return (a + b - 1) // b


def _device_tuning():
    """(n_parallel_cores, target_block_bytes) tuned per TPU generation."""
    kind = ""
    try:
        kind = jax.devices()[0].device_kind.lower()
    except Exception:
        pass
    if "v7" in kind:
        # 2 TensorCores; 8 MiB blocks -> 16 MiB double-buffered, < 32 MiB scoped VMEM.
        return 2, 8 * 1024 * 1024
    if "v6" in kind:
        return 1, 6 * 1024 * 1024
    # v5e / unknown chips: stay well inside the 16 MiB default scoped-VMEM budget.
    return 1, 4 * 1024 * 1024


def _make_loss_kernel(tile_rows, chunk_rows):
    """Kernel accumulating vreg-shaped partial sums of x^2 and |x| into out_ref.

    out_ref block: (1, 2, SUBLANE, LANE); index 0 -> sum(x^2), 1 -> sum(|x|).
    The output block index depends only on the parallel axis, so it stays
    resident in VMEM across the reduction ("arbitrary") axis.
    """
    n_chunks = tile_rows // chunk_rows
    groups = chunk_rows // SUBLANE

    def kernel(x_ref, out_ref):
        @pl.when(pl.program_id(1) == 0)
        def _init():
            out_ref[...] = jnp.zeros_like(out_ref)

        def accum(start, carry):
            acc_sq, acc_ab = carry
            xs = x_ref[pl.ds(start, chunk_rows), :].astype(jnp.float32)
            xs3 = xs.reshape(groups, SUBLANE, LANE)   # sublane-group split, no relayout
            acc_sq = acc_sq + jnp.sum(xs3 * xs3, axis=0)
            acc_ab = acc_ab + jnp.sum(jnp.abs(xs3), axis=0)
            return acc_sq, acc_ab

        zero = jnp.zeros((SUBLANE, LANE), jnp.float32)
        if n_chunks == 1:
            acc_sq, acc_ab = accum(0, (zero, zero))
        else:
            def body(j, carry):
                start = pl.multiple_of(j * chunk_rows, chunk_rows)
                return accum(start, carry)
            acc_sq, acc_ab = lax.fori_loop(0, n_chunks, body, (zero, zero))

        out_ref[0, 0] += acc_sq
        out_ref[0, 1] += acc_ab

    return kernel


def _partial_sums(vals):
    v = vals.astype(jnp.float32)
    return jnp.stack([jnp.sum(v * v), jnp.sum(jnp.abs(v))])


def _raw_losses(x):
    """Single pass over x -> (mean(x**2), mean(|x|)) as f32 scalars."""
    n_total = x.size
    itemsize = jnp.dtype(x.dtype).itemsize
    # (8,128) for 4-byte, (16,128) for 2-byte, (32,128) for 1-byte dtypes.
    sub_mult = max(SUBLANE, 32 // itemsize)

    x_flat = x.reshape(-1)                 # contiguous row-major reshape (no copy)
    sums = jnp.zeros((2,), jnp.float32)

    lane_rem = n_total % LANE
    if lane_rem:
        # TODO(synk): rare lane-unaligned case; the prefix slice materializes a
        # copy.  A 1-D / manual-DMA kernel path would avoid it.
        main = n_total - lane_rem
        sums = sums + _partial_sums(x_flat[main:])
        x2d = x_flat[:main].reshape(-1, LANE)
    else:
        x2d = x_flat.reshape(-1, LANE)

    rows = x2d.shape[0]
    n_par, target_bytes = _device_tuning()
    target_rows = max(
        CHUNK_ROWS, (target_bytes // (LANE * itemsize)) // CHUNK_ROWS * CHUNK_ROWS
    )

    rows_per_core = _cdiv(rows, n_par) if rows else 0
    if rows_per_core >= CHUNK_ROWS:
        tile_rows = min(target_rows, (rows_per_core // CHUNK_ROWS) * CHUNK_ROWS)
        chunk_rows = CHUNK_ROWS
    else:
        tile_rows = max(sub_mult, (rows_per_core // sub_mult) * sub_mult)
        chunk_rows = tile_rows

    nb_full = rows // tile_rows if tile_rows else 0
    if nb_full < n_par:        # too little data for a 2-core split -> one core
        n_par = 1
    grid_inner = nb_full // n_par
    covered_rows = n_par * grid_inner * tile_rows

    if grid_inner > 0:
        out_shape = jax.ShapeDtypeStruct((n_par, 2, SUBLANE, LANE), jnp.float32)
        out_bytes = n_par * 2 * SUBLANE * LANE * 4
        gi = grid_inner
        partials = pl.pallas_call(
            _make_loss_kernel(tile_rows, chunk_rows),
            out_shape=out_shape,
            grid_spec=pltpu.PrefetchScalarGridSpec(
                num_scalar_prefetch=0,
                grid=(n_par, grid_inner),
                in_specs=[
                    pl.BlockSpec((tile_rows, LANE), lambda c, i: (c * gi + i, 0))
                ],
                out_specs=pl.BlockSpec(
                    (1, 2, SUBLANE, LANE), lambda c, i: (c, 0, 0, 0)
                ),
            ),
            compiler_params=pltpu.CompilerParams(
                # Leading size-n_par axis is "parallel" so a 2-TC chip (v7x) can
                # shard it; it has size 1 elsewhere.
                # TODO(synk): if xprof shows this axis serialized on v7x, switch
                # to pltpu.CORE_PARALLEL / pl.core_map for the core split.
                dimension_semantics=("parallel", "arbitrary"),
            ),
            cost_estimate=pl.CostEstimate(
                flops=4 * covered_rows * LANE,
                transcendentals=0,
                bytes_accessed=covered_rows * LANE * itemsize + out_bytes,
            ),
        )(x2d)
        sums = sums + jnp.stack([jnp.sum(partials[:, 0]), jnp.sum(partials[:, 1])])

    if covered_rows < rows:
        # Small tile-unaligned remainder (< one block per core): plain XLA reduce.
        sums = sums + _partial_sums(x2d[covered_rows:])

    inv_n = 1.0 / float(n_total)
    return sums[0] * inv_n, sums[1] * inv_n


class LossWarper:
    """JAX/Pallas re-implementation of the PyTorch LossWarper module."""

    def __init__(self, cfg):
        self.cfg = cfg

    def __call__(self, x, other_model=None):
        # other_model accepted for API parity; the wrapped losses don't use it.
        mse_raw, l1_raw = _raw_losses(x)
        raw = {"mse_loss": mse_raw, "l1_loss": l1_raw}

        loss_info = {}
        loss = jnp.float32(0.0)
        for loss_name, loss_kwargs in self.cfg.items():
            val = loss_kwargs["scale"] * raw[loss_name]
            mi = loss_kwargs.get("min", None)
            ma = loss_kwargs.get("max", None)
            # Safe denominator: avoids 0/0 NaN (also under jax.grad); identical
            # forward result for any non-zero loss value (norm of scalar == |.|).
            safe_abs = jnp.where(val == 0.0, 1.0, jnp.abs(val))
            # torch: if mi and val < mi: val = val / val.norm() * -mi
            if mi:
                val = jnp.where(val < mi, val / safe_abs * (-mi), val)
            # torch: if ma and val > ma: val = val / val.norm() * ma
            if ma:
                val = jnp.where(val > ma, val / safe_abs * ma, val)
            loss_info[loss_name] = val
            loss = loss + val
        loss_info["all"] = loss
        return loss_info


if __name__ == "__main__":
    # Deterministic synthetic config (module __init__ just stores cfg).
    cfg = {
        "mse_loss": {"scale": 1.0, "kwargs": {}, "max": 0.5},
        "l1_loss": {"scale": 2.0, "kwargs": {}, "min": 0.1},
    }
    warper = LossWarper(cfg)

    key = jax.random.PRNGKey(0)
    x = jax.random.normal(key, (2, 4, 16, 16), dtype=jnp.float32)  # NCHW

    out = warper(x)
    out = jax.tree_util.tree_map(jax.block_until_ready, out)

    # Pure-JAX reference check of the scalar semantics.
    mse_ref = jnp.mean(x.astype(jnp.float32) ** 2)
    l1_ref = jnp.mean(jnp.abs(x.astype(jnp.float32)))
    v_mse = 1.0 * mse_ref
    v_mse = jnp.where(v_mse > 0.5, v_mse / jnp.abs(v_mse) * 0.5, v_mse)
    v_l1 = 2.0 * l1_ref
    v_l1 = jnp.where(v_l1 < 0.1, v_l1 / jnp.abs(v_l1) * (-0.1), v_l1)
    ref_all = v_mse + v_l1

    assert jnp.allclose(out["mse_loss"], v_mse, rtol=1e-5, atol=1e-6)
    assert jnp.allclose(out["l1_loss"], v_l1, rtol=1e-5, atol=1e-6)
    assert jnp.allclose(out["all"], ref_all, rtol=1e-5, atol=1e-6)

    print("KERNEL_OK")
</pallas_src>

<mosaic_0001>
module attributes {stable_mosaic.version = 11 : i64} {
  func.func @kernel(%arg0: i32, %arg1: i32, %arg2: memref<16x128xf32, #tpu.memory_space<vmem>>, %arg3: memref<1x2x8x128xf32, #tpu.memory_space<vmem>>) attributes {dimension_semantics = [#tpu.dimension_semantics<parallel>, #tpu.dimension_semantics<arbitrary>], iteration_bounds = array<i64: 1, 1>, scalar_prefetch = 0 : i64, scratch_operands = 0 : i64, tpu.core_type = #tpu.core_type<tc>, window_params = [{transform_indices = @transform_0, window_bounds = array<i64: 16, 128>}, {transform_indices = @transform_1, window_bounds = array<i64: 1, 2, 8, 128>}]} {
    %c0_i32 = arith.constant 0 : i32
    %0 = arith.cmpi eq, %arg1, %c0_i32 : i32
    %1 = arith.extui %0 : i1 to i32
    %c0_i32_0 = arith.constant 0 : i32
    %2 = arith.cmpi ne, %1, %c0_i32_0 : i32
    scf.if %2 {
      %cst_19 = arith.constant 0.000000e+00 : f32
      %24 = vector.broadcast %cst_19 : f32 to vector<1x2x8x128xf32>
      %c0_20 = arith.constant 0 : index
      %c0_21 = arith.constant 0 : index
      %c0_22 = arith.constant 0 : index
      %c0_23 = arith.constant 0 : index
      %25 = vector.load %arg3[%c0_20, %c0_21, %c0_22, %c0_23] : memref<1x2x8x128xf32, #tpu.memory_space<vmem>>, vector<1x2x8x128xf32>
      tpu.vector_store %arg3[%c0_20, %c0_21, %c0_22, %c0_23], %24 {strides = array<i32>} : memref<1x2x8x128xf32, #tpu.memory_space<vmem>>, vector<1x2x8x128xf32>,
    } else {
    }
    %cst = arith.constant 0.000000e+00 : f32
    %3 = vector.broadcast %cst : f32 to vector<8x128xf32>
    %c0 = arith.constant 0 : index
    %c0_1 = arith.constant 0 : index
    %4 = vector.load %arg2[%c0, %c0_1] : memref<16x128xf32, #tpu.memory_space<vmem>>, vector<16x128xf32>
    %5 = vector.shape_cast %4 : vector<16x128xf32> to vector<2x8x128xf32>
    %6 = arith.mulf %5, %5 : vector<2x8x128xf32>
    %cst_2 = arith.constant dense<0.000000e+00> : vector<8x128xf32>
    %7 = vector.multi_reduction <add>, %6, %cst_2 [0] : vector<2x8x128xf32> to vector<8x128xf32>
    %8 = arith.addf %3, %7 : vector<8x128xf32>
    %9 = math.absf %5 : vector<2x8x128xf32>
    %cst_3 = arith.constant dense<0.000000e+00> : vector<8x128xf32>
    %10 = vector.multi_reduction <add>, %9, %cst_3 [0] : vector<2x8x128xf32> to vector<8x128xf32>
    %11 = arith.addf %3, %10 : vector<8x128xf32>
    %c0_4 = arith.constant 0 : index
    %c0_5 = arith.constant 0 : index
    %c0_6 = arith.constant 0 : index
    %c0_7 = arith.constant 0 : index
    %12 = vector.load %arg3[%c0_4, %c0_5, %c0_6, %c0_7] : memref<1x2x8x128xf32, #tpu.memory_space<vmem>>, vector<1x1x8x128xf32>
    %13 = vector.shape_cast %12 : vector<1x1x8x128xf32> to vector<8x128xf32>
    %14 = arith.addf %13, %8 : vector<8x128xf32>
    %c0_8 = arith.constant 0 : index
    %c0_9 = arith.constant 0 : index
    %c0_10 = arith.constant 0 : index
    %c0_11 = arith.constant 0 : index
    %15 = vector.load %arg3[%c0_8, %c0_9, %c0_10, %c0_11] : memref<1x2x8x128xf32, #tpu.memory_space<vmem>>, vector<1x1x8x128xf32>
    %16 = vector.shape_cast %15 : vector<1x1x8x128xf32> to vector<8x128xf32>
    %17 = vector.shape_cast %14 : vector<8x128xf32> to vector<1x1x8x128xf32>
    tpu.vector_store %arg3[%c0_8, %c0_9, %c0_10, %c0_11], %17 {strides = array<i32>} : memref<1x2x8x128xf32, #tpu.memory_space<vmem>>, vector<1x1x8x128xf32>,
    %c0_12 = arith.constant 0 : index
    %c1 = arith.constant 1 : index
    %c0_13 = arith.constant 0 : index
    %c0_14 = arith.constant 0 : index
    %18 = vector.load %arg3[%c0_12, %c1, %c0_13, %c0_14] : memref<1x2x8x128xf32, #tpu.memory_space<vmem>>, vector<1x1x8x128xf32>
    %19 = vector.shape_cast %18 : vector<1x1x8x128xf32> to vector<8x128xf32>
    %20 = arith.addf %19, %11 : vector<8x128xf32>
    %c0_15 = arith.constant 0 : index
    %c1_16 = arith.constant 1 : index
    %c0_17 = arith.constant 0 : index
    %c0_18 = arith.constant 0 : index
    %21 = vector.load %arg3[%c0_15, %c1_16, %c0_17, %c0_18] : memref<1x2x8x128xf32, #tpu.memory_space<vmem>>, vector<1x1x8x128xf32>
    %22 = vector.shape_cast %21 : vector<1x1x8x128xf32> to vector<8x128xf32>
    %23 = vector.shape_cast %20 : vector<8x128xf32> to vector<1x1x8x128xf32>
    tpu.vector_store %arg3[%c0_15, %c1_16, %c0_17, %c0_18], %23 {strides = array<i32>} : memref<1x2x8x128xf32, #tpu.memory_space<vmem>>, vector<1x1x8x128xf32>,
    return
  }
  func.func @transform_0(%arg0: i32, %arg1: i32) -> (i32, i32) {
    %c1_i32 = arith.constant 1 : i32
    %0 = arith.muli %arg0, %c1_i32 : i32
    %1 = arith.addi %0, %arg1 : i32
    %c0_i32 = arith.constant 0 : i32
    %c0_i32_0 = arith.constant 0 : i32
    return %1, %c0_i32 : i32, i32
  }
  func.func @transform_1(%arg0: i32, %arg1: i32) -> (i32, i32, i32, i32) {
    %c0_i32 = arith.constant 0 : i32
    %c0_i32_0 = arith.constant 0 : i32
    %c0_i32_1 = arith.constant 0 : i32
    %c0_i32_2 = arith.constant 0 : i32
    return %arg0, %c0_i32, %c0_i32_0, %c0_i32_1 : i32, i32, i32, i32
  }
}

</mosaic_0001>

<bundles_post_ra>
// kernel: tpu_custom_call.1
= control target key start
LH: loop header
LB: loop body
LE: loop exit
PB: predicated region body
PF: predicated region fallthrough
CT: control target
= control target key end

     0   :  { %6 = vsyncpa [#allocation3], 0  ;;  %s138_s0 = inlined_call_operand.hbm [shape: f32[16,128], index: 0, kind: input, shape index: {}]   ;;  %s139_s1 = inlined_call_operand.hbm [shape: f32[1,2,8,128], index: 1, kind: output, shape index: {}]  }
   0x1   :  { %7 = vsyncpa [#allocation4], 0  ;;  %s118_s6 = smov [#allocation2]  }
   0x2   :  { %s17_s7 = sshll.u32 %s118_s6, 4  ;;  %s18_s7 = int_to_ptr.vmem [resolvable:$true] %s17_s7 }
   0x3   :  { %s82_s8 = scalar_lea.vmem %s18_s7, 256  ;;  %p87_p1 = scmp.lt.s32.totalorder %s18_s7, %s18_s7 }
   0x4   :  { %p83_p0 = scmp.ne.s32.totalorder %s18_s7, %s82_s8  ;;  %p88_p2 = scmp.lt.s32.totalorder %s82_s8, %s82_s8 }
   0x6   :  { %p89_p3 = por %p88_p2, %p87_p1 }
   0x8   :  { %p90_p4 = pnand %p89_p3, %p83_p0 }
   0xa   :  { %93 = shalt.err (!%p90_p4)
}
   0xb   :  { %s119_s9 = smov 128   ;;  %s120_s10 = smov 8  }
   0xc   :  { %23 = dma.hbm_to_vmem [thread:$0]  %s138_s0, 256, %s18_s7, [#allocation3], %s119_s9, %s119_s9, %s120_s10  }
   0xd   :  { %114 = dma.done.wait [#allocation3], 256  }
   0xe   :  { %115 = vsyncadd [#allocation3], 4294967040  ;;  %v35_v0 = vld [vmem:[#allocation2] sm:$0xff]  ;;  %v36_v1 = vld [vmem:[#allocation2 + $0x8] sm:$0xff]  ;;  %s121_s13 = smov [#allocation5]  }
   0xf   :  { %v37_v2 = vmul.f32 %v35_v0, %v35_v0  ;;  %v38_v3 = vmul.f32 %v36_v1, %v36_v1  ;;  %v41_v4 = vand.u32 2147483647, %v35_v0  ;;  %v42_v5 = vand.u32 2147483647, %v36_v1  ;;  %s57_s14 = sshll.u32 %s121_s13, 4  ;;  %s58_s14 = int_to_ptr.vmem [resolvable:$true] %s57_s14 }
  0x10   :  { %s94_s15 = scalar_lea.vmem %s58_s14, 256  ;;  %p99_p6 = scmp.lt.s32.totalorder %s58_s14, %s58_s14 }
  0x11   :  { %v39_v6 = vadd.f32 %v38_v3, %v37_v2  ;;  %v43_v7 = vadd.f32 %v42_v5, %v41_v4  ;;  %p95_p5 = scmp.ne.s32.totalorder %s58_s14, %s94_s15  ;;  %p100_p7 = scmp.lt.s32.totalorder %s94_s15, %s94_s15 }
  0x13   :  { %47 = vst [vmem:[#allocation5] sm:$0xff] %v39_v6  ;;  %51 = vst [vmem:[#allocation5 + $0x8] sm:$0xff] %v43_v7  ;;  %p101_p8 = por %p100_p7, %p99_p6 }
  0x15   :  { %p102_p9 = pnand %p101_p8, %p95_p5 }
  0x17   :  { %105 = shalt.err (!%p102_p9)
}
  0x18   :  { %63 = dma.vmem_to_hbm [thread:$0]  %s58_s14, 256, %s139_s1, [#allocation4], %s119_s9, %s119_s9, %s120_s10  }
  0x19   :  { %116 = dma.done.wait [#allocation4], 256  }
  0x1a   :  { %117 = vsyncadd [#allocation4], 4294967040 }
  0x1b   :  { %67 = vsyncpa [#allocation3], 1 }
  0x1c   :  { %68 = vsyncpa [#allocation4], 1 }

</bundles_post_ra>
